<compile_context>
chip_gen: v6e
topology: v6e:2x2x1
jax: 0.10.0
libtpu: 0.0.40
codegen_flags: <defaults>
</compile_context>

<pallas_src>
import functools

import jax
import jax.numpy as jnp
from jax.experimental import pallas as pl
from jax.experimental.pallas import tpu as pltpu


_MIB = 1 << 20


def _round_down(a, b):
    return (a // b) * b


def _vmem_capacity_bytes():
    # Generation-aware VMEM capacity (v5e/v6e: 128 MiB, v7x: 64 MiB per TC).
    try:
        cap = int(pltpu.get_tpu_info().vmem_capacity_bytes)
        if cap > 0:
            return cap
    except Exception:  # off-TPU / older-jax fallback: assume the smallest (v7x)
        pass
    return 64 * _MIB


# ----------------------------- Pass 1: LayerNorm -----------------------------


def _layernorm_kernel(x_ref, g_ref, b_ref, y_ref, *, eps):
    # x_ref: (tm_ln, E) input rows; g_ref/b_ref: (1, E); y_ref: (tm_ln, E) bf16.
    x = x_ref[...].astype(jnp.float32)
    mean = jnp.mean(x, axis=-1, keepdims=True)
    centered = x - mean
    var = jnp.mean(centered * centered, axis=-1, keepdims=True)
    xn = centered * jax.lax.rsqrt(var + eps)
    y = xn * g_ref[...].astype(jnp.float32) + b_ref[...].astype(jnp.float32)
    y_ref[...] = y.astype(y_ref.dtype)


# --------------------------- Pass 2: head matmul ------------------------------


def _head_matmul_kernel(y_ref, w_ref, o_ref):
    # y_ref: (tm, E) bf16, w_ref: (E, tv) bf16, o_ref: (tm, tv).
    # The y block index only depends on the row axis, so Pallas keeps it
    # resident across the inner vocab axis (no re-DMA); the inner loop streams
    # weight tiles straight into the MXU (bf16 x bf16, f32 accumulate).
    o_ref[...] = jnp.dot(
        y_ref[...], w_ref[...], preferred_element_type=jnp.float32
    ).astype(o_ref.dtype)


def prepare_head_weight(w_ev, compute_dtype=jnp.bfloat16):
    """Cast the (E, V) head weight to the MXU compute dtype.

    Call ONCE at parameter-load time (a PyTorch nn.Linear weight of shape
    (V, E) should be transposed to (E, V) first) so the kernel never pays a
    per-call full-weight cast/copy of HBM traffic.
    """
    return jnp.asarray(w_ev, dtype=compute_dtype)


def _select_tiles(M, E, V, out_bytes, vmem_cap):
    """Generation-aware tile selection from actual VMEM capacity."""
    budget = int(0.8 * vmem_cap)

    # Vocab tile: lane-dense output, keep >= 512 cols when possible.
    tv = V if V <= 512 else 512

    # Matmul row tile: largest multiple of 8 (capped at 1024 -- already well
    # past the v5e/v6e/v7x weight-DMA break-even) whose double-buffered working
    # set fits:  ws(tm) = 2*tm*E*2 (y) + 2*E*tv*2 (W) + 2*tm*tv*out_bytes (out)
    w_tile_bytes = 4 * E * tv
    per_row_bytes = 4 * E + 2 * tv * out_bytes
    tm_fit = _round_down(max(budget - w_tile_bytes, 0) // per_row_bytes, 8)
    # TODO(synk): if tm_fit < 8 (huge E*tv, e.g. E >= 8192 on v7x) add a K(E)
    # grid axis with an f32 accumulator scratch instead of shrinking tiles.
    tm_cap = max(8, min(1024, tm_fit))
    tm = M if M <= tm_cap else tm_cap

    # LayerNorm row tile (memory-bound): ws = (2*4 + 2*2) * tm_ln * E.
    tmln_fit = _round_down(budget // (12 * E), 8)
    tmln_cap = max(8, min(1024, tmln_fit))
    tm_ln = M if M <= tmln_cap else tmln_cap

    return tm, tv, tm_ln


def gpt_output(x, gamma, beta, w_ev, *, eps, out_dtype=jnp.float32,
               compute_dtype=jnp.bfloat16, tm=None, tv=None, tm_ln=None):
    """x: (B, S, E); gamma/beta: (E,); w_ev: (E, V), ideally already bf16.

    Returns (B, S, V) logits in out_dtype.
    """
    B, S, E = x.shape
    Ew, V = w_ev.shape
    assert Ew == E
    M = B * S

    out_bytes = jnp.dtype(out_dtype).itemsize
    vmem_cap = _vmem_capacity_bytes()
    tm_a, tv_a, tmln_a = _select_tiles(M, E, V, out_bytes, vmem_cap)
    tm = tm_a if tm is None else tm
    tv = tv_a if tv is None else tv
    tm_ln = tmln_a if tm_ln is None else tm_ln

    x2 = x.reshape(M, E)
    g2 = gamma.reshape(1, E)
    b2 = beta.reshape(1, E)
    if w_ev.dtype != compute_dtype:
        # Fallback only -- prefer prepare_head_weight() once at load time so
        # this full-weight cast is not paid on every call.
        w_ev = w_ev.astype(compute_dtype)

    grid_m = pl.cdiv(M, tm)
    grid_v = pl.cdiv(V, tv)
    grid_mln = pl.cdiv(M, tm_ln)

    # ---- Pass 1: y = LayerNorm(x) * gamma + beta, stored bf16 ---------------
    ln_ws = 2 * tm_ln * E * x2.dtype.itemsize + 2 * tm_ln * E * 2
    ln_vmem_limit = int(min(vmem_cap, max(ln_ws + 8 * _MIB, 32 * _MIB)))
    y = pl.pallas_call(
        functools.partial(_layernorm_kernel, eps=eps),
        out_shape=jax.ShapeDtypeStruct((M, E), compute_dtype),
        grid=(grid_mln,),
        in_specs=[
            pl.BlockSpec((tm_ln, E), lambda i: (i, 0)),
            pl.BlockSpec((1, E), lambda i: (0, 0)),
            pl.BlockSpec((1, E), lambda i: (0, 0)),
        ],
        out_specs=pl.BlockSpec((tm_ln, E), lambda i: (i, 0)),
        compiler_params=pltpu.CompilerParams(
            dimension_semantics=("parallel",),
            vmem_limit_bytes=ln_vmem_limit,
        ),
        cost_estimate=pl.CostEstimate(
            flops=8 * M * E,
            transcendentals=M,  # one rsqrt per row
            bytes_accessed=M * E * (x2.dtype.itemsize + 2) + 2 * E * 4,
        ),
    )(x2, g2, b2)

    # ---- Pass 2: logits = y @ W (bf16 x bf16 -> f32 accumulate) -------------
    mm_ws = 2 * tm * E * 2 + 2 * E * tv * 2 + 2 * tm * tv * out_bytes
    mm_vmem_limit = int(min(vmem_cap, max(mm_ws + 8 * _MIB, 32 * _MIB)))
    out = pl.pallas_call(
        _head_matmul_kernel,
        out_shape=jax.ShapeDtypeStruct((M, V), out_dtype),
        grid=(grid_m, grid_v),
        in_specs=[
            pl.BlockSpec((tm, E), lambda i, j: (i, 0)),   # resident across j
            pl.BlockSpec((E, tv), lambda i, j: (0, j)),   # streamed weight cols
        ],
        out_specs=pl.BlockSpec((tm, tv), lambda i, j: (i, j)),
        compiler_params=pltpu.CompilerParams(
            # No cross-iteration state in this pass -> both axes parallel, so
            # v7x's two TensorCores get balanced work regardless of grid_m
            # parity.  (No-op on single-TC v5e/v6e.)
            dimension_semantics=("parallel", "parallel"),
            vmem_limit_bytes=mm_vmem_limit,
        ),
        cost_estimate=pl.CostEstimate(
            flops=2 * M * E * V,
            transcendentals=0,
            bytes_accessed=(
                M * E * 2                # y read (once per row tile)
                + grid_m * E * V * 2     # full weight re-streamed per row tile
                + M * V * out_bytes      # logits writeback
            ),
        ),
    )(y, w_ev)

    return out.reshape(B, S, V)


if __name__ == "__main__":
    # Small, module-consistent shapes.
    batch, seq = 2, 8
    n_embd = 32
    vocab_size = 256
    layer_norm_epsilon = 1e-5

    key = jax.random.PRNGKey(0)
    kx, kw, kg, kb = jax.random.split(key, 4)

    x = jax.random.normal(kx, (batch, seq, n_embd), dtype=jnp.float32)

    # Deterministic synthetic parameters (nn.LayerNorm / nn.Linear shapes).
    gamma = 1.0 + 0.1 * jax.random.normal(kg, (n_embd,), dtype=jnp.float32)
    beta = 0.05 * jax.random.normal(kb, (n_embd,), dtype=jnp.float32)
    # nn.Linear(n_embd, vocab_size, bias=False) weight is (vocab, n_embd);
    # stored transposed as (n_embd, vocab) and converted ONCE for the kernel.
    w_ev = (
        jax.random.normal(kw, (n_embd, vocab_size), dtype=jnp.float32)
        / jnp.sqrt(jnp.float32(n_embd))
    )
    w_bf16 = prepare_head_weight(w_ev)   # one-time cast, not per-call

    logits = gpt_output(x, gamma, beta, w_bf16, eps=layer_norm_epsilon)
    logits = jax.block_until_ready(logits)
    assert logits.shape == (batch, seq, vocab_size)

    # Pure-JAX reference with matching bf16 rounding of the matmul operands.
    mean = jnp.mean(x, axis=-1, keepdims=True)
    var = jnp.mean((x - mean) ** 2, axis=-1, keepdims=True)
    xn = (x - mean) * jax.lax.rsqrt(var + layer_norm_epsilon)
    y_ref = (xn * gamma + beta).astype(jnp.bfloat16).astype(jnp.float32)
    w_ref = w_ev.astype(jnp.bfloat16).astype(jnp.float32)
    ref = jnp.einsum(
        "bse,ev->bsv", y_ref, w_ref, precision=jax.lax.Precision.HIGHEST
    )
    assert jnp.allclose(logits, ref, atol=2e-3, rtol=2e-3), (
        float(jnp.max(jnp.abs(logits - ref)))
    )

    print("KERNEL_OK")
</pallas_src>

<mosaic_0001>
module attributes {stable_mosaic.version = 11 : i64} {
  func.func @_layernorm_kernel(%arg0: i32, %arg1: memref<16x32xf32, #tpu.memory_space<vmem>>, %arg2: memref<1x32xf32, #tpu.memory_space<vmem>>, %arg3: memref<1x32xf32, #tpu.memory_space<vmem>>, %arg4: memref<16x32xbf16, #tpu.memory_space<vmem>>) attributes {dimension_semantics = [#tpu.dimension_semantics<parallel>], iteration_bounds = array<i64: 1>, scalar_prefetch = 0 : i64, scratch_operands = 0 : i64, tpu.core_type = #tpu.core_type<tc>, window_params = [{transform_indices = @transform_0, window_bounds = array<i64: 16, 32>}, {pipeline_mode = #tpu.pipeline_mode<synchronous>, transform_indices = @transform_1, window_bounds = array<i64: 1, 32>}, {pipeline_mode = #tpu.pipeline_mode<synchronous>, transform_indices = @transform_2, window_bounds = array<i64: 1, 32>}, {transform_indices = @transform_3, window_bounds = array<i64: 16, 32>}]} {
    %c0 = arith.constant 0 : index
    %c0_0 = arith.constant 0 : index
    %0 = vector.load %arg1[%c0, %c0_0] : memref<16x32xf32, #tpu.memory_space<vmem>>, vector<16x32xf32>
    %cst = arith.constant dense<0.000000e+00> : vector<16xf32>
    %1 = vector.multi_reduction <add>, %0, %cst [1] : vector<16x32xf32> to vector<16xf32>
    %2 = vector.shape_cast %1 : vector<16xf32> to vector<16x1xf32>
    %cst_1 = arith.constant 3.200000e+01 : f32
    %3 = vector.broadcast %cst_1 : f32 to vector<16x1xf32>
    %4 = arith.divf %2, %3 : vector<16x1xf32>
    %5 = vector.broadcast %4 : vector<16x1xf32> to vector<16x32xf32>
    %6 = arith.subf %0, %5 : vector<16x32xf32>
    %7 = arith.mulf %6, %6 : vector<16x32xf32>
    %cst_2 = arith.constant dense<0.000000e+00> : vector<16xf32>
    %8 = vector.multi_reduction <add>, %7, %cst_2 [1] : vector<16x32xf32> to vector<16xf32>
    %9 = vector.shape_cast %8 : vector<16xf32> to vector<16x1xf32>
    %cst_3 = arith.constant 3.200000e+01 : f32
    %10 = vector.broadcast %cst_3 : f32 to vector<16x1xf32>
    %11 = arith.divf %9, %10 : vector<16x1xf32>
    %cst_4 = arith.constant 9.99999974E-6 : f32
    %12 = vector.broadcast %cst_4 : f32 to vector<16x1xf32>
    %13 = arith.addf %11, %12 : vector<16x1xf32>
    %14 = math.rsqrt %13 : vector<16x1xf32>
    %15 = vector.broadcast %14 : vector<16x1xf32> to vector<16x32xf32>
    %16 = arith.mulf %6, %15 : vector<16x32xf32>
    %c0_5 = arith.constant 0 : index
    %c0_6 = arith.constant 0 : index
    %17 = vector.load %arg2[%c0_5, %c0_6] : memref<1x32xf32, #tpu.memory_space<vmem>>, vector<1x32xf32>
    %18 = vector.broadcast %17 : vector<1x32xf32> to vector<16x32xf32>
    %19 = arith.mulf %16, %18 : vector<16x32xf32>
    %c0_7 = arith.constant 0 : index
    %c0_8 = arith.constant 0 : index
    %20 = vector.load %arg3[%c0_7, %c0_8] : memref<1x32xf32, #tpu.memory_space<vmem>>, vector<1x32xf32>
    %21 = vector.broadcast %20 : vector<1x32xf32> to vector<16x32xf32>
    %22 = arith.addf %19, %21 : vector<16x32xf32>
    %23 = arith.truncf %22 : vector<16x32xf32> to vector<16x32xbf16>
    %c0_9 = arith.constant 0 : index
    %c0_10 = arith.constant 0 : index
    %24 = vector.load %arg4[%c0_9, %c0_10] : memref<16x32xbf16, #tpu.memory_space<vmem>>, vector<16x32xbf16>
    tpu.vector_store %arg4[%c0_9, %c0_10], %23 {strides = array<i32>} : memref<16x32xbf16, #tpu.memory_space<vmem>>, vector<16x32xbf16>,
    return
  }
  func.func @transform_0(%arg0: i32) -> (i32, i32) {
    %c0_i32 = arith.constant 0 : i32
    %c0_i32_0 = arith.constant 0 : i32
    return %arg0, %c0_i32 : i32, i32
  }
  func.func @transform_1(%arg0: i32) -> (i32, i32) {
    %c0_i32 = arith.constant 0 : i32
    %c0_i32_0 = arith.constant 0 : i32
    %c0_i32_1 = arith.constant 0 : i32
    return %c0_i32, %c0_i32_0 : i32, i32
  }
  func.func @transform_2(%arg0: i32) -> (i32, i32) {
    %c0_i32 = arith.constant 0 : i32
    %c0_i32_0 = arith.constant 0 : i32
    %c0_i32_1 = arith.constant 0 : i32
    return %c0_i32, %c0_i32_0 : i32, i32
  }
  func.func @transform_3(%arg0: i32) -> (i32, i32) {
    %c0_i32 = arith.constant 0 : i32
    %c0_i32_0 = arith.constant 0 : i32
    return %arg0, %c0_i32 : i32, i32
  }
}

</mosaic_0001>

<bundles_post_ra>
// kernel: tpu_custom_call.1
= control target key start
LH: loop header
LB: loop body
LE: loop exit
PB: predicated region body
PF: predicated region fallthrough
CT: control target
= control target key end

     0   :  { %8 = vsyncpa [#allocation3], 0  ;;  %s207_s0 = inlined_call_operand.hbm [shape: f32[16,32], index: 0, kind: input, shape index: {}]   ;;  %s208_s1 = inlined_call_operand.vmem [shape: f32[1,32], index: 1, kind: input, shape index: {}]   ;;  %s209_s2 = inlined_call_operand.vmem [shape: f32[1,32], index: 2, kind: input, shape index: {}]   ;;  %s210_s3 = inlined_call_operand.hbm [shape: bf16[16,32], index: 3, kind: output, shape index: {}]  }
   0x1   :  { %9 = vsyncpa [#allocation4], 0  ;;  %s165_s12 = smov [#allocation2]  }
   0x2   :  { %s15_s13 = sshll.u32 %s165_s12, 4  ;;  %s16_s13 = int_to_ptr.vmem [resolvable:$true] %s15_s13 }
   0x3   :  { %s129_s14 = scalar_lea.vmem %s16_s13, 256  ;;  %p134_p1 = scmp.lt.s32.totalorder %s16_s13, %s16_s13 }
   0x4   :  { %p130_p0 = scmp.ne.s32.totalorder %s16_s13, %s129_s14  ;;  %p135_p2 = scmp.lt.s32.totalorder %s129_s14, %s129_s14 }
   0x6   :  { %p136_p3 = por %p135_p2, %p134_p1 }
   0x8   :  { %p137_p4 = pnand %p136_p3, %p130_p0 }
   0xa   :  { %140 = shalt.err (!%p137_p4)
}
   0xb   :  { %s166_s15 = smov 128   ;;  %s167_s16 = smov 8  }
   0xc   :  { %21 = dma.hbm_to_vmem [thread:$0]  %s207_s0, 256, %s16_s13, [#allocation3], %s166_s15, %s166_s15, %s167_s16  }
   0xd   :  { %161 = dma.done.wait [#allocation3], 256  }
   0xe   :  { %162 = vsyncadd [#allocation3], 4294967040  ;;  %vm31_vm0 = vcmask 261120   ;;  %v29_v0 = vld [vmem:[#allocation2] sm:$0xff]  ;;  %v30_v1 = vld [vmem:[#allocation2 + $0x8] sm:$0xff]  ;;  %vm85_vm1 = vcmask 257024  }
   0xf   :  { %v32_v2 = vsel %vm31_vm0, %v29_v0, 0.0  ;;  %v35_v3 = vsel %vm31_vm0, %v30_v1, 0.0  ;;  %v105_v21 = vld [vmem:[%s208_s1] ss:$0 sm:$0xff]  ;;  %s168_s22 = smov [#allocation5]  }
  0x10   :  { %33 = vadd.xlane.f32.xlu0 %v32_v2  ;;  %v106_v23 = vld [vmem:[%s209_s2] ss:$0 sm:$0xff]  ;;  %s93_s23 = sshll.u32 %s168_s22, 4  ;;  %s94_s23 = int_to_ptr.vmem [resolvable:$true] %s93_s23 }
  0x11   :  { %s141_s1 = scalar_lea.vmem %s94_s23, 128  ;;  %p146_p6 = scmp.lt.s32.totalorder %s94_s23, %s94_s23 }
  0x12   :  { %p142_p5 = scmp.ne.s32.totalorder %s94_s23, %s141_s1  ;;  %p147_p7 = scmp.lt.s32.totalorder %s141_s1, %s141_s1 }
  0x14   :  { %36 = vadd.xlane.f32.xlu0 %v35_v3  ;;  %p148_p8 = por %p147_p7, %p146_p6 }
  0x16   :  { %p149_p9 = pnand %p148_p8, %p142_p5 }
  0x99   :  { %v34_v4 = vpop.xlane.xlu0 %33 }
  0x9a   :  { %v39_v5 = vmul.f32 0.03125, %v34_v4 }
  0x9c   :  { %v41_v6 = vsub.f32 %v29_v0, %v39_v5 }
  0x9d   :  { %v37_v7 = vpop.xlane.xlu0 %36 }
  0x9e   :  { %v40_v8 = vmul.f32 0.03125, %v37_v7  ;;  %v43_v9 = vmul.f32 %v41_v6, %v41_v6 }
  0xa0   :  { %v42_v10 = vsub.f32 %v30_v1, %v40_v8  ;;  %v45_v11 = vsel %vm31_vm0, %v43_v9, 0.0 }
  0xa1   :  { %46 = vadd.xlane.f32.xlu1 %v45_v11 }
  0xa2   :  { %v44_v12 = vmul.f32 %v42_v10, %v42_v10 }
  0xa4   :  { %v48_v13 = vsel %vm31_vm0, %v44_v12, 0.0 }
  0xa5   :  { %49 = vadd.xlane.f32.xlu1 %v48_v13 }
 0x12a   :  { %v47_v14 = vpop.xlane.xlu1 %46 }
 0x12b   :  { %v51_v15 = vmul.f32 0.03125, %v47_v14 }
 0x12d   :  { %v53_v16 = vadd.f32 1e-05, %v51_v15 }
 0x12e   :  { %v50_v17 = vpop.xlane.xlu1 %49 }
 0x12f   :  { %117 = vrsqrt.f32 %v53_v16  ;;  %v52_v18 = vmul.f32 0.03125, %v50_v17 }
 0x131   :  { %v54_v19 = vadd.f32 1e-05, %v52_v18 }
 0x133   :  { %119 = vrsqrt.f32 %v54_v19 }
 0x13c   :  { %v118_v20 = vpop.eup %117 }
 0x13d   :  { %v57_v22 = vmul.f32 %v118_v20, %v41_v6 }
 0x13f   :  { %v66_v24 = vmul.f32 %v105_v21, %v57_v22 }
 0x140   :  { %v120_v25 = vpop.eup %119 }
 0x141   :  { %v58_v26 = vmul.f32 %v120_v25, %v42_v10  ;;  %v75_v27 = vadd.f32 %v106_v23, %v66_v24 }
 0x143   :  { %v67_v28 = vmul.f32 %v105_v21, %v58_v26  ;;  %v109_v29 = vpack.c.bf16 %v75_v27, %v75_v27 }
 0x145   :  { %v76_v30 = vadd.f32 %v106_v23, %v67_v28  ;;  %86 = vst.msk [vmem:[#allocation5] sm:$0xf] %vm85_vm1, %v109_v29 }
 0x147   :  { %v110_v31 = vpack.c.bf16 %v76_v30, %v76_v30 }
 0x149   :  { %87 = vst.msk [vmem:[#allocation5 + $0x4] sm:$0xf] %vm85_vm1, %v110_v31 }
 0x14a   :  { %152 = shalt.err (!%p149_p9)
}
 0x14b   :  { %s169_s2 = smov 64   ;;  %s170_s24 = smov 4  }
 0x14c   :  { %99 = dma.vmem_to_hbm [thread:$0]  %s94_s23, 128, %s210_s3, [#allocation4], %s169_s2, %s169_s2, %s170_s24  }
 0x14d   :  { %163 = dma.done.wait [#allocation4], 128  }
 0x14e   :  { %164 = vsyncadd [#allocation4], 4294967168 }
 0x14f   :  { %103 = vsyncpa [#allocation3], 1 }
 0x150   :  { %104 = vsyncpa [#allocation4], 1 }

</bundles_post_ra>
